<compile_context>
chip_gen: v7x
topology: tpu7x:2x2x1
jax: 0.10.0
libtpu: 0.0.40
codegen_flags: <defaults>
</compile_context>

<pallas_src>
import math

import jax
import jax.numpy as jnp
from jax.experimental import pallas as pl
from jax.experimental.pallas import tpu as pltpu

_LANES = 128
_SUBLANES = 8


def _quat_to_so3_kernel(q_ref, r_ref):
    # q_ref: (4, tile_r, 128) -- rows are w, x, y, z; each a dense 2-D slab
    # r_ref: (9, tile_r, 128) -- rows are the 9 rotation-matrix entries
    w = q_ref[0]
    x = q_ref[1]
    y = q_ref[2]
    z = q_ref[3]

    ww = w * w
    wx = w * x
    wy = w * y
    wz = w * z
    xx = x * x
    xy = x * y
    xz = x * z
    yy = y * y
    yz = y * z
    zz = z * z

    two = jnp.float32(2.0)
    r_ref[0] = ww + xx - yy - zz
    r_ref[1] = two * (xy - wz)
    r_ref[2] = two * (wy + xz)
    r_ref[3] = two * (xy + wz)
    r_ref[4] = ww - xx + yy - zz
    r_ref[5] = two * (yz - wx)
    r_ref[6] = two * (xz - wy)
    r_ref[7] = two * (wx + yz)
    r_ref[8] = ww - xx - yy + zz


def quaternion_to_so3_cf(q_cf, *, tile_r=256):
    """Channels-first core: q_cf (4, R, 128) f32 -> (9, R, 128) f32.

    R must be a multiple of tile_r (tile_r a multiple of 8). No layout glue:
    callers that keep quaternions channels-first avoid all transpose traffic.
    """
    assert q_cf.ndim == 3 and q_cf.shape[0] == 4 and q_cf.shape[2] == _LANES
    rows = q_cf.shape[1]
    assert rows % tile_r == 0 and tile_r % _SUBLANES == 0
    grid = (rows // tile_r,)
    return pl.pallas_call(
        _quat_to_so3_kernel,
        out_shape=jax.ShapeDtypeStruct((9, rows, _LANES), jnp.float32),
        grid_spec=pltpu.PrefetchScalarGridSpec(
            num_scalar_prefetch=0,
            grid=grid,
            in_specs=[pl.BlockSpec((4, tile_r, _LANES), lambda i: (0, i, 0))],
            out_specs=pl.BlockSpec((9, tile_r, _LANES), lambda i: (0, i, 0)),
        ),
        compiler_params=pltpu.CompilerParams(
            dimension_semantics=("parallel",),
        ),
    )(q_cf)


def quaternion_to_so3(q, *, tile_r=256):
    """q: (..., 4) -> (N, 3, 3) float32, N = prod(batch dims)."""
    assert q.shape[-1] == 4, "last dim must be 4 (quaternion)"
    q = q.astype(jnp.float32)
    n = math.prod(q.shape[:-1])

    # Clamp the tile for small problems so padding stays tiny; keep tile_r a
    # multiple of 8 (sublane constraint).
    rows_needed = -(-max(n, 1) // _LANES)
    tile_r = min(tile_r, -(-rows_needed // _SUBLANES) * _SUBLANES)

    tile_quats = tile_r * _LANES
    n_pad = -(-n // tile_quats) * tile_quats
    rows = n_pad // _LANES

    # Layout glue (plain XLA; pad + transpose + contiguous reshape).
    # TODO(synk): if the surrounding model can keep quaternions channels-first,
    # call quaternion_to_so3_cf directly and skip this transpose HBM traffic.
    q_flat = q.reshape(n, 4)
    if n_pad != n:
        q_flat = jnp.pad(q_flat, ((0, n_pad - n), (0, 0)))
    q_cf = q_flat.T.reshape(4, rows, _LANES)

    r_cf = quaternion_to_so3_cf(q_cf, tile_r=tile_r)

    # (9, rows, 128) -> (9, n_pad) -> (n_pad, 9) -> slice -> (n, 3, 3)
    r = r_cf.reshape(9, n_pad).T[:n].reshape(n, 3, 3)
    return r


def _reference_jax(q):
    """Pure-JAX replica of the PyTorch forward for validation."""
    q = q.astype(jnp.float32)
    pairs = [(i, j) for i in range(4) for j in range(i, 4)]
    prods = [q[..., i] * q[..., j] for (i, j) in pairs]
    ww, wx, wy, wz, xx, xy, xz, yy, yz, zz = prods
    out = jnp.stack(
        [
            ww + xx - yy - zz, 2 * (xy - wz), 2 * (wy + xz),
            2 * (xy + wz), ww - xx + yy - zz, 2 * (yz - wx),
            2 * (xz - wy), 2 * (wx + yz), ww - xx - yy + zz,
        ],
        axis=-1,
    )
    return out.reshape(-1, 3, 3)


if __name__ == "__main__":
    key = jax.random.PRNGKey(0)

    # Small example consistent with the module: batch of (2, 64) quaternions
    # -> 128 rotation matrices.
    q_small = jax.random.normal(key, (2, 64, 4), dtype=jnp.float32)
    out_small = jax.block_until_ready(quaternion_to_so3(q_small))
    ref_small = _reference_jax(q_small)
    assert out_small.shape == (128, 3, 3), out_small.shape
    assert jnp.allclose(out_small, ref_small, atol=1e-5, rtol=1e-5), \
        "mismatch vs reference (small)"

    # Second check that exercises the large-tile, multi-step (parallel) grid.
    key2 = jax.random.PRNGKey(1)
    q_big = jax.random.normal(key2, (1024, 128, 4), dtype=jnp.float32)
    out_big = jax.block_until_ready(quaternion_to_so3(q_big))
    ref_big = _reference_jax(q_big)
    assert out_big.shape == (1024 * 128, 3, 3), out_big.shape
    assert jnp.allclose(out_big, ref_big, atol=1e-4, rtol=1e-4), \
        "mismatch vs reference (big)"

    print("KERNEL_OK")
</pallas_src>

<mosaic_0001>
module attributes {stable_mosaic.version = 11 : i64} {
  func.func @_quat_to_so3_kernel(%arg0: i32, %arg1: memref<4x8x128xf32, #tpu.memory_space<vmem>>, %arg2: memref<9x8x128xf32, #tpu.memory_space<vmem>>) attributes {dimension_semantics = [#tpu.dimension_semantics<parallel>], iteration_bounds = array<i64: 1>, scalar_prefetch = 0 : i64, scratch_operands = 0 : i64, tpu.core_type = #tpu.core_type<tc>, window_params = [{transform_indices = @transform_0, window_bounds = array<i64: 4, 8, 128>}, {transform_indices = @transform_1, window_bounds = array<i64: 9, 8, 128>}]} {
    %c0 = arith.constant 0 : index
    %c0_0 = arith.constant 0 : index
    %c0_1 = arith.constant 0 : index
    %0 = vector.load %arg1[%c0, %c0_0, %c0_1] : memref<4x8x128xf32, #tpu.memory_space<vmem>>, vector<1x8x128xf32>
    %1 = vector.shape_cast %0 : vector<1x8x128xf32> to vector<8x128xf32>
    %c1 = arith.constant 1 : index
    %c0_2 = arith.constant 0 : index
    %c0_3 = arith.constant 0 : index
    %2 = vector.load %arg1[%c1, %c0_2, %c0_3] : memref<4x8x128xf32, #tpu.memory_space<vmem>>, vector<1x8x128xf32>
    %3 = vector.shape_cast %2 : vector<1x8x128xf32> to vector<8x128xf32>
    %c2 = arith.constant 2 : index
    %c0_4 = arith.constant 0 : index
    %c0_5 = arith.constant 0 : index
    %4 = vector.load %arg1[%c2, %c0_4, %c0_5] : memref<4x8x128xf32, #tpu.memory_space<vmem>>, vector<1x8x128xf32>
    %5 = vector.shape_cast %4 : vector<1x8x128xf32> to vector<8x128xf32>
    %c3 = arith.constant 3 : index
    %c0_6 = arith.constant 0 : index
    %c0_7 = arith.constant 0 : index
    %6 = vector.load %arg1[%c3, %c0_6, %c0_7] : memref<4x8x128xf32, #tpu.memory_space<vmem>>, vector<1x8x128xf32>
    %7 = vector.shape_cast %6 : vector<1x8x128xf32> to vector<8x128xf32>
    %8 = arith.mulf %1, %1 : vector<8x128xf32>
    %9 = arith.mulf %1, %3 : vector<8x128xf32>
    %10 = arith.mulf %1, %5 : vector<8x128xf32>
    %11 = arith.mulf %1, %7 : vector<8x128xf32>
    %12 = arith.mulf %3, %3 : vector<8x128xf32>
    %13 = arith.mulf %3, %5 : vector<8x128xf32>
    %14 = arith.mulf %3, %7 : vector<8x128xf32>
    %15 = arith.mulf %5, %5 : vector<8x128xf32>
    %16 = arith.mulf %5, %7 : vector<8x128xf32>
    %17 = arith.mulf %7, %7 : vector<8x128xf32>
    %18 = arith.addf %8, %12 : vector<8x128xf32>
    %19 = arith.subf %18, %15 : vector<8x128xf32>
    %20 = arith.subf %19, %17 : vector<8x128xf32>
    %c0_8 = arith.constant 0 : index
    %c0_9 = arith.constant 0 : index
    %c0_10 = arith.constant 0 : index
    %21 = vector.load %arg2[%c0_8, %c0_9, %c0_10] : memref<9x8x128xf32, #tpu.memory_space<vmem>>, vector<1x8x128xf32>
    %22 = vector.shape_cast %21 : vector<1x8x128xf32> to vector<8x128xf32>
    %23 = vector.shape_cast %20 : vector<8x128xf32> to vector<1x8x128xf32>
    tpu.vector_store %arg2[%c0_8, %c0_9, %c0_10], %23 {strides = array<i32>} : memref<9x8x128xf32, #tpu.memory_space<vmem>>, vector<1x8x128xf32>,
    %24 = arith.subf %13, %11 : vector<8x128xf32>
    %cst = arith.constant 2.000000e+00 : f32
    %25 = vector.broadcast %cst : f32 to vector<8x128xf32>
    %26 = arith.mulf %25, %24 : vector<8x128xf32>
    %c1_11 = arith.constant 1 : index
    %c0_12 = arith.constant 0 : index
    %c0_13 = arith.constant 0 : index
    %27 = vector.load %arg2[%c1_11, %c0_12, %c0_13] : memref<9x8x128xf32, #tpu.memory_space<vmem>>, vector<1x8x128xf32>
    %28 = vector.shape_cast %27 : vector<1x8x128xf32> to vector<8x128xf32>
    %29 = vector.shape_cast %26 : vector<8x128xf32> to vector<1x8x128xf32>
    tpu.vector_store %arg2[%c1_11, %c0_12, %c0_13], %29 {strides = array<i32>} : memref<9x8x128xf32, #tpu.memory_space<vmem>>, vector<1x8x128xf32>,
    %30 = arith.addf %10, %14 : vector<8x128xf32>
    %cst_14 = arith.constant 2.000000e+00 : f32
    %31 = vector.broadcast %cst_14 : f32 to vector<8x128xf32>
    %32 = arith.mulf %31, %30 : vector<8x128xf32>
    %c2_15 = arith.constant 2 : index
    %c0_16 = arith.constant 0 : index
    %c0_17 = arith.constant 0 : index
    %33 = vector.load %arg2[%c2_15, %c0_16, %c0_17] : memref<9x8x128xf32, #tpu.memory_space<vmem>>, vector<1x8x128xf32>
    %34 = vector.shape_cast %33 : vector<1x8x128xf32> to vector<8x128xf32>
    %35 = vector.shape_cast %32 : vector<8x128xf32> to vector<1x8x128xf32>
    tpu.vector_store %arg2[%c2_15, %c0_16, %c0_17], %35 {strides = array<i32>} : memref<9x8x128xf32, #tpu.memory_space<vmem>>, vector<1x8x128xf32>,
    %36 = arith.addf %13, %11 : vector<8x128xf32>
    %cst_18 = arith.constant 2.000000e+00 : f32
    %37 = vector.broadcast %cst_18 : f32 to vector<8x128xf32>
    %38 = arith.mulf %37, %36 : vector<8x128xf32>
    %c3_19 = arith.constant 3 : index
    %c0_20 = arith.constant 0 : index
    %c0_21 = arith.constant 0 : index
    %39 = vector.load %arg2[%c3_19, %c0_20, %c0_21] : memref<9x8x128xf32, #tpu.memory_space<vmem>>, vector<1x8x128xf32>
    %40 = vector.shape_cast %39 : vector<1x8x128xf32> to vector<8x128xf32>
    %41 = vector.shape_cast %38 : vector<8x128xf32> to vector<1x8x128xf32>
    tpu.vector_store %arg2[%c3_19, %c0_20, %c0_21], %41 {strides = array<i32>} : memref<9x8x128xf32, #tpu.memory_space<vmem>>, vector<1x8x128xf32>,
    %42 = arith.subf %8, %12 : vector<8x128xf32>
    %43 = arith.addf %42, %15 : vector<8x128xf32>
    %44 = arith.subf %43, %17 : vector<8x128xf32>
    %c4 = arith.constant 4 : index
    %c0_22 = arith.constant 0 : index
    %c0_23 = arith.constant 0 : index
    %45 = vector.load %arg2[%c4, %c0_22, %c0_23] : memref<9x8x128xf32, #tpu.memory_space<vmem>>, vector<1x8x128xf32>
    %46 = vector.shape_cast %45 : vector<1x8x128xf32> to vector<8x128xf32>
    %47 = vector.shape_cast %44 : vector<8x128xf32> to vector<1x8x128xf32>
    tpu.vector_store %arg2[%c4, %c0_22, %c0_23], %47 {strides = array<i32>} : memref<9x8x128xf32, #tpu.memory_space<vmem>>, vector<1x8x128xf32>,
    %48 = arith.subf %16, %9 : vector<8x128xf32>
    %cst_24 = arith.constant 2.000000e+00 : f32
    %49 = vector.broadcast %cst_24 : f32 to vector<8x128xf32>
    %50 = arith.mulf %49, %48 : vector<8x128xf32>
    %c5 = arith.constant 5 : index
    %c0_25 = arith.constant 0 : index
    %c0_26 = arith.constant 0 : index
    %51 = vector.load %arg2[%c5, %c0_25, %c0_26] : memref<9x8x128xf32, #tpu.memory_space<vmem>>, vector<1x8x128xf32>
    %52 = vector.shape_cast %51 : vector<1x8x128xf32> to vector<8x128xf32>
    %53 = vector.shape_cast %50 : vector<8x128xf32> to vector<1x8x128xf32>
    tpu.vector_store %arg2[%c5, %c0_25, %c0_26], %53 {strides = array<i32>} : memref<9x8x128xf32, #tpu.memory_space<vmem>>, vector<1x8x128xf32>,
    %54 = arith.subf %14, %10 : vector<8x128xf32>
    %cst_27 = arith.constant 2.000000e+00 : f32
    %55 = vector.broadcast %cst_27 : f32 to vector<8x128xf32>
    %56 = arith.mulf %55, %54 : vector<8x128xf32>
    %c6 = arith.constant 6 : index
    %c0_28 = arith.constant 0 : index
    %c0_29 = arith.constant 0 : index
    %57 = vector.load %arg2[%c6, %c0_28, %c0_29] : memref<9x8x128xf32, #tpu.memory_space<vmem>>, vector<1x8x128xf32>
    %58 = vector.shape_cast %57 : vector<1x8x128xf32> to vector<8x128xf32>
    %59 = vector.shape_cast %56 : vector<8x128xf32> to vector<1x8x128xf32>
    tpu.vector_store %arg2[%c6, %c0_28, %c0_29], %59 {strides = array<i32>} : memref<9x8x128xf32, #tpu.memory_space<vmem>>, vector<1x8x128xf32>,
    %60 = arith.addf %9, %16 : vector<8x128xf32>
    %cst_30 = arith.constant 2.000000e+00 : f32
    %61 = vector.broadcast %cst_30 : f32 to vector<8x128xf32>
    %62 = arith.mulf %61, %60 : vector<8x128xf32>
    %c7 = arith.constant 7 : index
    %c0_31 = arith.constant 0 : index
    %c0_32 = arith.constant 0 : index
    %63 = vector.load %arg2[%c7, %c0_31, %c0_32] : memref<9x8x128xf32, #tpu.memory_space<vmem>>, vector<1x8x128xf32>
    %64 = vector.shape_cast %63 : vector<1x8x128xf32> to vector<8x128xf32>
    %65 = vector.shape_cast %62 : vector<8x128xf32> to vector<1x8x128xf32>
    tpu.vector_store %arg2[%c7, %c0_31, %c0_32], %65 {strides = array<i32>} : memref<9x8x128xf32, #tpu.memory_space<vmem>>, vector<1x8x128xf32>,
    %66 = arith.subf %8, %12 : vector<8x128xf32>
    %67 = arith.subf %66, %15 : vector<8x128xf32>
    %68 = arith.addf %67, %17 : vector<8x128xf32>
    %c8 = arith.constant 8 : index
    %c0_33 = arith.constant 0 : index
    %c0_34 = arith.constant 0 : index
    %69 = vector.load %arg2[%c8, %c0_33, %c0_34] : memref<9x8x128xf32, #tpu.memory_space<vmem>>, vector<1x8x128xf32>
    %70 = vector.shape_cast %69 : vector<1x8x128xf32> to vector<8x128xf32>
    %71 = vector.shape_cast %68 : vector<8x128xf32> to vector<1x8x128xf32>
    tpu.vector_store %arg2[%c8, %c0_33, %c0_34], %71 {strides = array<i32>} : memref<9x8x128xf32, #tpu.memory_space<vmem>>, vector<1x8x128xf32>,
    return
  }
  func.func @transform_0(%arg0: i32) -> (i32, i32, i32) {
    %c0_i32 = arith.constant 0 : i32
    %c0_i32_0 = arith.constant 0 : i32
    %c0_i32_1 = arith.constant 0 : i32
    return %c0_i32, %arg0, %c0_i32_0 : i32, i32, i32
  }
  func.func @transform_1(%arg0: i32) -> (i32, i32, i32) {
    %c0_i32 = arith.constant 0 : i32
    %c0_i32_0 = arith.constant 0 : i32
    %c0_i32_1 = arith.constant 0 : i32
    return %c0_i32, %arg0, %c0_i32_0 : i32, i32, i32
  }
}

</mosaic_0001>

<bundles_post_ra>
// kernel: tpu_custom_call.1
= control target key start
LH: loop header
LB: loop body
LE: loop exit
PB: predicated region body
PF: predicated region fallthrough
CT: control target
= control target key end

     0   :  { %6 = vsyncpa [#allocation3], 0  ;;  %s190_s0 = inlined_call_operand.hbm [shape: f32[4,8,128], index: 0, kind: input, shape index: {}]   ;;  %s191_s1 = inlined_call_operand.hbm [shape: f32[9,8,128], index: 1, kind: output, shape index: {}]  }
   0x1   :  { %7 = vsyncpa [#allocation4], 0  ;;  %s146_s6 = smov [#allocation2]   ;;  %s98_s10 = scalar_lea.hbm %s190_s0, 512 }
   0x2   :  { %s13_s7 = sshll.u32 %s146_s6, 4  ;;  %p99_p0 = scmp.ne.s32.totalorder %s190_s0, %s98_s10  ;;  %s14_s7 = int_to_ptr.vmem [resolvable:$true] %s13_s7 }
   0x3   :  { %p102_p1 = scmp.lt.u32.totalorder %s98_s10, %s190_s0 }
   0x5   :  { %p104_p2 = pnand %p102_p1, %p99_p0 }
   0x7   :  { %107 = shalt.err (!%p104_p2)
}
   0x8   :  { %s108_s15 = scalar_lea.vmem %s14_s7, 512  ;;  %p113_p4 = scmp.lt.s32.totalorder %s14_s7, %s14_s7 }
   0x9   :  { %p109_p3 = scmp.ne.s32.totalorder %s14_s7, %s108_s15  ;;  %p114_p5 = scmp.lt.s32.totalorder %s108_s15, %s108_s15 }
   0xb   :  { %p115_p6 = por %p114_p5, %p113_p4 }
   0xd   :  { %p116_p7 = pnand %p115_p6, %p109_p3 }
   0xf   :  { %119 = shalt.err (!%p116_p7)
}
  0x10   :  { %s147_s16 = smov 128   ;;  %s148_s17 = smov 8  }
  0x11   :  { %19 = dma.hbm_to_vmem [thread:$0]  %s190_s0, 512, %s14_s7, [#allocation3], %s147_s16, %s147_s16, %s148_s17  }
  0x12   :  { %142 = dma.done.wait [#allocation3], 512  }
  0x13   :  { %143 = vsyncadd [#allocation3], 4294966784  ;;  %v23_v0 = vld [vmem:[#allocation2] sm:$0xff]  ;;  %v25_v1 = vld [vmem:[#allocation2 + $0x8] sm:$0xff]  ;;  %s149_s0 = smov [#allocation5]  }
  0x14   :  { %v27_v2 = vld [vmem:[#allocation2 + $0x10] sm:$0xff]  ;;  %v29_v3 = vld [vmem:[#allocation2 + $0x18] sm:$0xff]  ;;  %v30_v4 = vmul.f32 %v23_v0, %v23_v0  ;;  %v34_v5 = vmul.f32 %v25_v1, %v25_v1  ;;  %v31_v14 = vmul.f32 %v25_v1, %v23_v0  ;;  %s82_s20 = sshll.u32 %s149_s0, 4  ;;  %s83_s20 = int_to_ptr.vmem [resolvable:$true] %s82_s20 }
  0x15   :  { %v37_v6 = vmul.f32 %v27_v2, %v27_v2  ;;  %v35_v7 = vmul.f32 %v27_v2, %v25_v1  ;;  %v39_v8 = vmul.f32 %v29_v3, %v29_v3  ;;  %v33_v9 = vmul.f32 %v29_v3, %v23_v0  ;;  %s120_s21 = scalar_lea.vmem %s83_s20, 1152  ;;  %p125_p9 = scmp.lt.s32.totalorder %s83_s20, %s83_s20 }
  0x16   :  { %v32_v10 = vmul.f32 %v27_v2, %v23_v0  ;;  %v36_v11 = vmul.f32 %v29_v3, %v25_v1  ;;  %v40_v12 = vadd.f32 %v34_v5, %v30_v4  ;;  %v56_v13 = vsub.f32 %v30_v4, %v34_v5  ;;  %p121_p8 = scmp.ne.s32.totalorder %s83_s20, %s120_s21  ;;  %p126_p10 = scmp.lt.s32.totalorder %s120_s21, %s120_s21 }
  0x17   :  { %v38_v15 = vmul.f32 %v29_v3, %v27_v2  ;;  %v44_v16 = vsub.f32 %v35_v7, %v33_v9  ;;  %v52_v18 = vadd.f32 %v35_v7, %v33_v9 }
  0x18   :  { %v48_v17 = vadd.f32 %v36_v11, %v32_v10  ;;  %v65_v19 = vsub.f32 %v36_v11, %v32_v10  ;;  %v41_v20 = vsub.f32 %v40_v12, %v37_v6  ;;  %v57_v21 = vadd.f32 %v56_v13, %v37_v6  ;;  %p127_p11 = por %p126_p10, %p125_p9 }
  0x19   :  { %v61_v22 = vsub.f32 %v38_v15, %v31_v14  ;;  %v69_v23 = vadd.f32 %v38_v15, %v31_v14  ;;  %v45_v24 = vmul.f32 2.0, %v44_v16  ;;  %v53_v26 = vmul.f32 2.0, %v52_v18 }
  0x1a   :  { %v49_v25 = vmul.f32 2.0, %v48_v17  ;;  %v66_v27 = vmul.f32 2.0, %v65_v19  ;;  %v42_v28 = vsub.f32 %v41_v20, %v39_v8  ;;  %v58_v29 = vsub.f32 %v57_v21, %v39_v8  ;;  %p128_p12 = pnand %p127_p11, %p121_p8 }
  0x1b   :  { %v62_v30 = vmul.f32 2.0, %v61_v22  ;;  %v70_v31 = vmul.f32 2.0, %v69_v23  ;;  %47 = vst [vmem:[#allocation5 + $0x8] sm:$0xff] %v45_v24  ;;  %55 = vst [vmem:[#allocation5 + $0x18] sm:$0xff] %v53_v26  ;;  %v73_v32 = vsub.f32 %v56_v13, %v37_v6 }
  0x1c   :  { %51 = vst [vmem:[#allocation5 + $0x10] sm:$0xff] %v49_v25  ;;  %68 = vst [vmem:[#allocation5 + $0x30] sm:$0xff] %v66_v27 }
  0x1d   :  { %43 = vst [vmem:[#allocation5] sm:$0xff] %v42_v28  ;;  %60 = vst [vmem:[#allocation5 + $0x20] sm:$0xff] %v58_v29  ;;  %v74_v33 = vadd.f32 %v73_v32, %v39_v8 }
  0x1e   :  { %64 = vst [vmem:[#allocation5 + $0x28] sm:$0xff] %v62_v30  ;;  %72 = vst [vmem:[#allocation5 + $0x38] sm:$0xff] %v70_v31 }
  0x1f   :  { %76 = vst [vmem:[#allocation5 + $0x40] sm:$0xff] %v74_v33 }
  0x20   :  { %131 = shalt.err (!%p128_p12)
}
  0x21   :  { %s132_s24 = scalar_lea.hbm %s191_s1, 1152 }
  0x22   :  { %p133_p13 = scmp.ne.s32.totalorder %s191_s1, %s132_s24  ;;  %p136_p0 = scmp.lt.u32.totalorder %s132_s24, %s191_s1 }
  0x24   :  { %p138_p1 = pnand %p136_p0, %p133_p13 }
  0x26   :  { %141 = shalt.err (!%p138_p1)
}
  0x27   :  { %88 = dma.vmem_to_hbm [thread:$0]  %s83_s20, 1152, %s191_s1, [#allocation4], %s147_s16, %s147_s16, %s148_s17  }
  0x28   :  { %144 = dma.done.wait [#allocation4], 1152  }
  0x29   :  { %145 = vsyncadd [#allocation4], 4294966144 }
  0x2a   :  { %92 = vsyncpa [#allocation3], 1 }
  0x2b   :  { %93 = vsyncpa [#allocation4], 1 }

</bundles_post_ra>
